<compile_context>
chip_gen: v6e
topology: v6e:2x2x1
jax: 0.10.0
libtpu: 0.0.40
codegen_flags: <defaults>
</compile_context>

<pallas_src>
import jax
import jax.numpy as jnp
import numpy as np
from jax.experimental import pallas as pl
from jax.experimental.pallas import tpu as pltpu

EPS = 1e-5


# ----------------------------------------------------------------------------
# Pallas kernel: ALL (MAFLayer + BatchNormLayer) blocks, fully fused.
# ----------------------------------------------------------------------------
def maf_fused_kernel(x_ref, w1_ref, b1_ref, w2_ref, b2_ref,
                     w3m_ref, w3p_ref, vec_ref, y_ref, ld_ref):
    n_layers = w1_ref.shape[0]
    x = x_ref[...]                                   # (B, D) f32
    batch = x.shape[0]
    ld = jnp.zeros((batch, 1), jnp.float32)          # data-dependent per-row term
    ld_bn = jnp.zeros((), jnp.float32)               # scalar BatchNorm term (added once)
    inv_b = 1.0 / batch
    inv_bm1 = 1.0 / (batch - 1)                      # unbiased var (torch.var)

    # n_layers is small and static -> fully unrolled; activations never leave VMEM.
    for l in range(n_layers):
        # ---- MADE masked MLP (masks + column reversals already folded into weights) ----
        h = jnp.maximum(
            jnp.dot(x, w1_ref[l], preferred_element_type=jnp.float32) + b1_ref[l], 0.0)
        h = jnp.maximum(
            jnp.dot(h, w2_ref[l], preferred_element_type=jnp.float32) + b2_ref[l], 0.0)

        vec = vec_ref[l]                             # (5, D): b3_mu, b3_logp, gamma, beta, log_gamma
        mu = jnp.dot(h, w3m_ref[l], preferred_element_type=jnp.float32) + vec[0:1]
        logp = jnp.dot(h, w3p_ref[l], preferred_element_type=jnp.float32) + vec[1:2]
        gamma = vec[2:3]
        beta = vec[3:4]
        log_gamma = vec[4:5]

        # ---- MAF affine transform (flip folded into params; no permutation here) ----
        u = (x - mu) * jnp.exp(0.5 * logp)
        ld = ld + 0.5 * jnp.sum(logp, axis=1, keepdims=True)

        # ---- BatchNorm flow layer: training mode, whole-batch stats, single pass ----
        s1 = jnp.sum(u, axis=0, keepdims=True)       # (1, D)
        s2 = jnp.sum(u * u, axis=0, keepdims=True)   # (1, D)
        mean = s1 * inv_b
        var = (s2 - s1 * mean) * inv_bm1             # unbiased (torch.var semantics)
        inv_std = jax.lax.rsqrt(var + EPS)           # EUP rsqrt (free slot), no VPU divide
        x = gamma * (u - mean) * inv_std + beta
        ld_bn = ld_bn + jnp.sum(log_gamma - 0.5 * jnp.log(var + EPS))

    y_ref[...] = x
    ld_ref[...] = ld + ld_bn


def _maf_forward_impl(x, stacked_params):
    B, D = x.shape
    assert B >= 2, "BatchNorm training-mode unbiased variance needs batch >= 2"
    n_layers = stacked_params[0].shape[0]
    vmem = pl.BlockSpec(memory_space=pltpu.MemorySpace.VMEM)
    # TODO(synk): for very large batches, add a grid over batch tiles with a
    # two-pass BatchNorm (accumulate sum/sumsq across tiles) instead of the
    # whole-batch-resident statistics used here, and re-size vmem_limit_bytes
    # per chip generation (v7x has only 64 MiB physical VMEM).
    y, ld = pl.pallas_call(
        maf_fused_kernel,
        out_shape=(jax.ShapeDtypeStruct((B, D), jnp.float32),
                   jax.ShapeDtypeStruct((B, 1), jnp.float32)),
        in_specs=[vmem] * (1 + len(stacked_params)),
        out_specs=(vmem, vmem),
        compiler_params=pltpu.CompilerParams(vmem_limit_bytes=32 * 1024 * 1024),
    )(x, *stacked_params)
    if n_layers % 2 == 1:
        # Odd number of reversals: undo the single deferred flip outside the kernel.
        # TODO(synk): move this reverse in-kernel (exchange-matrix matmul or lane
        # permute) to avoid the extra post-kernel (B, D) HBM round trip.
        y = y[:, ::-1]
    return y, ld[:, 0]


maf_forward = jax.jit(_maf_forward_impl)


# ----------------------------------------------------------------------------
# Parameter / mask construction (glue, plain JAX / numpy)
# ----------------------------------------------------------------------------
def made_masks(dim, hidden_dims):
    """Sequential-degree MADE masks; output has 2*dim units (gaussian head)."""
    degrees = [np.arange(1, dim + 1)]
    for h in hidden_dims:
        degrees.append((np.arange(h) % max(dim - 1, 1)) + 1)
    masks = []
    for l in range(len(hidden_dims)):
        m_prev, m_cur = degrees[l], degrees[l + 1]
        masks.append((m_cur[None, :] >= m_prev[:, None]).astype(np.float32))
    m_out = np.tile(np.arange(1, dim + 1), 2)
    masks.append((m_out[None, :] > degrees[-1][:, None]).astype(np.float32))
    return masks  # shapes: (D,H1), (H1,H2), (H2,2D)


def init_maf_params(key, dim, n_layers, hidden_dims):
    """Per-layer tuples (w1,b1,w2,b2,w3,b3,log_gamma,beta) with MADE masks folded in."""
    assert len(hidden_dims) == 2, "kernel is specialized for two hidden layers"
    masks = made_masks(dim, hidden_dims)
    sizes = [dim] + list(hidden_dims) + [2 * dim]
    params = []
    for _ in range(n_layers):
        layer = []
        for li in range(3):
            key, kw, kb = jax.random.split(key, 3)
            w = 0.1 * jax.random.normal(kw, (sizes[li], sizes[li + 1]), jnp.float32)
            w = w * jnp.asarray(masks[li])                      # fold MADE mask into weight
            b = 0.1 * jax.random.normal(kb, (1, sizes[li + 1]), jnp.float32)
            layer += [w, b]
        key, kg, kt = jax.random.split(key, 3)
        # non-zero BN params so the flip-folding is actually exercised by the test
        log_gamma = 0.1 * jax.random.normal(kg, (1, dim), jnp.float32)
        beta = 0.1 * jax.random.normal(kt, (1, dim), jnp.float32)
        layer += [log_gamma, beta]
        params.append(tuple(layer))
    return params


def fold_params_for_kernel(params):
    """Fold the per-layer column reversal into the parameters and stack over layers.

    The kernel works on an "un-flipped" representation z with flip-parity l%2:
      * parity 1 (input flipped):  reverse W1 rows (consume the incoming flip) and
        reverse W3/b3 output columns so mu/logp come out already in z-order; the
        layer's own output flip then cancels, so BN params stay unchanged.
      * parity 0 (input un-flipped): defer this layer's output flip by reversing
        the per-column BatchNorm parameters (log_gamma, beta) instead.
    log_det terms are permutation-invariant, so they are unchanged.
    One final flip (if n_layers is odd) is applied outside the kernel.

    Returns 7 stacked arrays:
      W1 (L,D,H1), b1 (L,1,H1), W2 (L,H1,H2), b2 (L,1,H2),
      W3_mu (L,H2,D), W3_logp (L,H2,D),
      vecD (L,5,D) = [b3_mu, b3_logp, gamma=exp(log_gamma), beta, log_gamma].
    """
    W1s, B1s, W2s, B2s, W3Ms, W3Ps, VECs = [], [], [], [], [], [], []
    for l, (w1, b1, w2, b2, w3, b3, lg, beta) in enumerate(params):
        D = w1.shape[0]
        w3m, w3p = w3[:, :D], w3[:, D:]
        b3m, b3p = b3[:, :D], b3[:, D:]
        if l % 2 == 1:
            w1 = w1[::-1, :]
            w3m, w3p = w3m[:, ::-1], w3p[:, ::-1]
            b3m, b3p = b3m[:, ::-1], b3p[:, ::-1]
        else:
            lg, beta = lg[:, ::-1], beta[:, ::-1]
        gamma = jnp.exp(lg)                                     # precompute exp(log_gamma)
        W1s.append(w1); B1s.append(b1); W2s.append(w2); B2s.append(b2)
        W3Ms.append(w3m); W3Ps.append(w3p)
        VECs.append(jnp.concatenate([b3m, b3p, gamma, beta, lg], axis=0))   # (5, D)
    stack = lambda xs: jnp.stack(xs, axis=0)
    return (stack(W1s), stack(B1s), stack(W2s), stack(B2s),
            stack(W3Ms), stack(W3Ps), stack(VECs))


# ----------------------------------------------------------------------------
# Pure-JAX reference (torch-faithful, uses the ORIGINAL un-folded parameters)
# ----------------------------------------------------------------------------
def maf_forward_ref(x, params):
    log_det_sum = jnp.zeros((x.shape[0],), jnp.float32)
    for (w1, b1, w2, b2, w3, b3, lg, beta) in params:
        D = x.shape[1]
        h = jnp.maximum(x @ w1 + b1, 0.0)
        h = jnp.maximum(h @ w2 + b2, 0.0)
        out = h @ w3 + b3
        mu, logp = out[:, :D], out[:, D:]
        u = (x - mu) * jnp.exp(0.5 * logp)
        u = u[:, ::-1]
        ld = 0.5 * jnp.sum(logp, axis=1)
        mean = jnp.mean(u, axis=0)
        var = jnp.sum((u - mean) ** 2, axis=0) / (u.shape[0] - 1)
        y = jnp.exp(lg[0]) * (u - mean) / jnp.sqrt(var + EPS) + beta[0]
        ld = ld + jnp.sum(lg[0] - 0.5 * jnp.log(var + EPS))
        x, log_det_sum = y, log_det_sum + ld
    return x, log_det_sum


if __name__ == "__main__":
    # small shapes consistent with the module; n_layers=3 exercises both flip
    # parities of the parameter fold AND the final deferred flip.
    dim, n_layers, hidden_dims, batch = 16, 3, [32, 32], 8

    key = jax.random.PRNGKey(0)
    key, kx = jax.random.split(key)
    x = jax.random.normal(kx, (batch, dim), jnp.float32)

    params = init_maf_params(key, dim, n_layers, hidden_dims)
    stacked = fold_params_for_kernel(params)

    u, log_det = maf_forward(x, stacked)
    u = jax.block_until_ready(u)
    log_det = jax.block_until_ready(log_det)

    u_ref, ld_ref = maf_forward_ref(x, params)
    np.testing.assert_allclose(np.asarray(u), np.asarray(u_ref), rtol=1e-4, atol=1e-4)
    np.testing.assert_allclose(np.asarray(log_det), np.asarray(ld_ref), rtol=1e-4, atol=1e-4)

    assert u.shape == (batch, dim) and log_det.shape == (batch,)
    print("KERNEL_OK")
</pallas_src>

<mosaic_0001>
module attributes {stable_mosaic.version = 11 : i64} {
  func.func @maf_fused_kernel(%arg0: memref<8x16xf32, #tpu.memory_space<vmem>>, %arg1: memref<3x16x32xf32, #tpu.memory_space<vmem>>, %arg2: memref<3x1x32xf32, #tpu.memory_space<vmem>>, %arg3: memref<3x32x32xf32, #tpu.memory_space<vmem>>, %arg4: memref<3x1x32xf32, #tpu.memory_space<vmem>>, %arg5: memref<3x32x16xf32, #tpu.memory_space<vmem>>, %arg6: memref<3x32x16xf32, #tpu.memory_space<vmem>>, %arg7: memref<3x5x16xf32, #tpu.memory_space<vmem>>, %arg8: memref<8x16xf32, #tpu.memory_space<vmem>>, %arg9: memref<8x1xf32, #tpu.memory_space<vmem>>) attributes {dimension_semantics = [], scalar_prefetch = 0 : i64, scratch_operands = 0 : i64, tpu.core_type = #tpu.core_type<tc>} {
    %c0 = arith.constant 0 : index
    %c0_0 = arith.constant 0 : index
    %0 = vector.load %arg0[%c0, %c0_0] : memref<8x16xf32, #tpu.memory_space<vmem>>, vector<8x16xf32>
    %cst = arith.constant 0.000000e+00 : f32
    %1 = vector.broadcast %cst : f32 to vector<8x1xf32>
    %c0_1 = arith.constant 0 : index
    %c0_2 = arith.constant 0 : index
    %c0_3 = arith.constant 0 : index
    %2 = vector.load %arg1[%c0_1, %c0_2, %c0_3] : memref<3x16x32xf32, #tpu.memory_space<vmem>>, vector<1x16x32xf32>
    %3 = vector.shape_cast %2 : vector<1x16x32xf32> to vector<16x32xf32>
    %cst_4 = arith.constant dense<0.000000e+00> : vector<8x32xf32>
    %4 = tpu.matmul %0, %3, %cst_4 {dimension_numbers = #tpu.dot_dimension_numbers<[1], [0], [0], [1], [0, 0, 1, 1], [], []>} : vector<8x16xf32>, vector<16x32xf32>, vector<8x32xf32> -> vector<8x32xf32>
    %c0_5 = arith.constant 0 : index
    %c0_6 = arith.constant 0 : index
    %c0_7 = arith.constant 0 : index
    %5 = vector.load %arg2[%c0_5, %c0_6, %c0_7] : memref<3x1x32xf32, #tpu.memory_space<vmem>>, vector<1x1x32xf32>
    %6 = vector.shape_cast %5 : vector<1x1x32xf32> to vector<1x32xf32>
    %7 = vector.broadcast %6 : vector<1x32xf32> to vector<8x32xf32>
    %8 = arith.addf %4, %7 : vector<8x32xf32>
    %cst_8 = arith.constant 0.000000e+00 : f32
    %9 = vector.broadcast %cst_8 : f32 to vector<8x32xf32>
    %10 = arith.maximumf %8, %9 : vector<8x32xf32>
    %c0_9 = arith.constant 0 : index
    %c0_10 = arith.constant 0 : index
    %c0_11 = arith.constant 0 : index
    %11 = vector.load %arg3[%c0_9, %c0_10, %c0_11] : memref<3x32x32xf32, #tpu.memory_space<vmem>>, vector<1x32x32xf32>
    %12 = vector.shape_cast %11 : vector<1x32x32xf32> to vector<32x32xf32>
    %cst_12 = arith.constant dense<0.000000e+00> : vector<8x32xf32>
    %13 = tpu.matmul %10, %12, %cst_12 {dimension_numbers = #tpu.dot_dimension_numbers<[1], [0], [0], [1], [0, 0, 1, 1], [], []>} : vector<8x32xf32>, vector<32x32xf32>, vector<8x32xf32> -> vector<8x32xf32>
    %c0_13 = arith.constant 0 : index
    %c0_14 = arith.constant 0 : index
    %c0_15 = arith.constant 0 : index
    %14 = vector.load %arg4[%c0_13, %c0_14, %c0_15] : memref<3x1x32xf32, #tpu.memory_space<vmem>>, vector<1x1x32xf32>
    %15 = vector.shape_cast %14 : vector<1x1x32xf32> to vector<1x32xf32>
    %16 = vector.broadcast %15 : vector<1x32xf32> to vector<8x32xf32>
    %17 = arith.addf %13, %16 : vector<8x32xf32>
    %cst_16 = arith.constant 0.000000e+00 : f32
    %18 = vector.broadcast %cst_16 : f32 to vector<8x32xf32>
    %19 = arith.maximumf %17, %18 : vector<8x32xf32>
    %c0_17 = arith.constant 0 : index
    %c0_18 = arith.constant 0 : index
    %c0_19 = arith.constant 0 : index
    %20 = vector.load %arg7[%c0_17, %c0_18, %c0_19] : memref<3x5x16xf32, #tpu.memory_space<vmem>>, vector<1x5x16xf32>
    %21 = vector.shape_cast %20 : vector<1x5x16xf32> to vector<5x16xf32>
    %c0_20 = arith.constant 0 : index
    %c0_21 = arith.constant 0 : index
    %c0_22 = arith.constant 0 : index
    %22 = vector.load %arg5[%c0_20, %c0_21, %c0_22] : memref<3x32x16xf32, #tpu.memory_space<vmem>>, vector<1x32x16xf32>
    %23 = vector.shape_cast %22 : vector<1x32x16xf32> to vector<32x16xf32>
    %cst_23 = arith.constant dense<0.000000e+00> : vector<8x16xf32>
    %24 = tpu.matmul %19, %23, %cst_23 {dimension_numbers = #tpu.dot_dimension_numbers<[1], [0], [0], [1], [0, 0, 1, 1], [], []>} : vector<8x32xf32>, vector<32x16xf32>, vector<8x16xf32> -> vector<8x16xf32>
    %25 = vector.extract_strided_slice %21 {offsets = [0, 0], sizes = [1, 16], strides = [1, 1]} : vector<5x16xf32> to vector<1x16xf32>
    %26 = vector.broadcast %25 : vector<1x16xf32> to vector<8x16xf32>
    %27 = arith.addf %24, %26 : vector<8x16xf32>
    %c0_24 = arith.constant 0 : index
    %c0_25 = arith.constant 0 : index
    %c0_26 = arith.constant 0 : index
    %28 = vector.load %arg6[%c0_24, %c0_25, %c0_26] : memref<3x32x16xf32, #tpu.memory_space<vmem>>, vector<1x32x16xf32>
    %29 = vector.shape_cast %28 : vector<1x32x16xf32> to vector<32x16xf32>
    %cst_27 = arith.constant dense<0.000000e+00> : vector<8x16xf32>
    %30 = tpu.matmul %19, %29, %cst_27 {dimension_numbers = #tpu.dot_dimension_numbers<[1], [0], [0], [1], [0, 0, 1, 1], [], []>} : vector<8x32xf32>, vector<32x16xf32>, vector<8x16xf32> -> vector<8x16xf32>
    %31 = vector.extract_strided_slice %21 {offsets = [1, 0], sizes = [1, 16], strides = [1, 1]} : vector<5x16xf32> to vector<1x16xf32>
    %32 = vector.broadcast %31 : vector<1x16xf32> to vector<8x16xf32>
    %33 = arith.addf %30, %32 : vector<8x16xf32>
    %34 = vector.extract_strided_slice %21 {offsets = [2, 0], sizes = [1, 16], strides = [1, 1]} : vector<5x16xf32> to vector<1x16xf32>
    %35 = vector.extract_strided_slice %21 {offsets = [3, 0], sizes = [1, 16], strides = [1, 1]} : vector<5x16xf32> to vector<1x16xf32>
    %36 = vector.extract_strided_slice %21 {offsets = [4, 0], sizes = [1, 16], strides = [1, 1]} : vector<5x16xf32> to vector<1x16xf32>
    %37 = arith.subf %0, %27 : vector<8x16xf32>
    %cst_28 = arith.constant 5.000000e-01 : f32
    %38 = vector.broadcast %cst_28 : f32 to vector<8x16xf32>
    %39 = arith.mulf %38, %33 : vector<8x16xf32>
    %40 = math.exp %39 : vector<8x16xf32>
    %41 = arith.mulf %37, %40 : vector<8x16xf32>
    %cst_29 = arith.constant dense<0.000000e+00> : vector<8xf32>
    %42 = vector.multi_reduction <add>, %33, %cst_29 [1] : vector<8x16xf32> to vector<8xf32>
    %43 = vector.shape_cast %42 : vector<8xf32> to vector<8x1xf32>
    %cst_30 = arith.constant 5.000000e-01 : f32
    %44 = vector.broadcast %cst_30 : f32 to vector<8x1xf32>
    %45 = arith.mulf %44, %43 : vector<8x1xf32>
    %46 = arith.addf %1, %45 : vector<8x1xf32>
    %cst_31 = arith.constant dense<0.000000e+00> : vector<16xf32>
    %47 = vector.multi_reduction <add>, %41, %cst_31 [0] : vector<8x16xf32> to vector<16xf32>
    %48 = vector.shape_cast %47 : vector<16xf32> to vector<1x16xf32>
    %49 = arith.mulf %41, %41 : vector<8x16xf32>
    %cst_32 = arith.constant dense<0.000000e+00> : vector<16xf32>
    %50 = vector.multi_reduction <add>, %49, %cst_32 [0] : vector<8x16xf32> to vector<16xf32>
    %51 = vector.shape_cast %50 : vector<16xf32> to vector<1x16xf32>
    %cst_33 = arith.constant 1.250000e-01 : f32
    %52 = vector.broadcast %cst_33 : f32 to vector<1x16xf32>
    %53 = arith.mulf %48, %52 : vector<1x16xf32>
    %54 = arith.mulf %48, %53 : vector<1x16xf32>
    %55 = arith.subf %51, %54 : vector<1x16xf32>
    %cst_34 = arith.constant 0.142857149 : f32
    %56 = vector.broadcast %cst_34 : f32 to vector<1x16xf32>
    %57 = arith.mulf %55, %56 : vector<1x16xf32>
    %cst_35 = arith.constant 9.99999974E-6 : f32
    %58 = vector.broadcast %cst_35 : f32 to vector<1x16xf32>
    %59 = arith.addf %57, %58 : vector<1x16xf32>
    %60 = math.rsqrt %59 : vector<1x16xf32>
    %61 = vector.broadcast %53 : vector<1x16xf32> to vector<8x16xf32>
    %62 = arith.subf %41, %61 : vector<8x16xf32>
    %63 = vector.broadcast %34 : vector<1x16xf32> to vector<8x16xf32>
    %64 = arith.mulf %63, %62 : vector<8x16xf32>
    %65 = vector.broadcast %60 : vector<1x16xf32> to vector<8x16xf32>
    %66 = arith.mulf %64, %65 : vector<8x16xf32>
    %67 = vector.broadcast %35 : vector<1x16xf32> to vector<8x16xf32>
    %68 = arith.addf %66, %67 : vector<8x16xf32>
    %cst_36 = arith.constant 9.99999974E-6 : f32
    %69 = vector.broadcast %cst_36 : f32 to vector<1x16xf32>
    %70 = arith.addf %57, %69 : vector<1x16xf32>
    %71 = math.log %70 : vector<1x16xf32>
    %cst_37 = arith.constant 5.000000e-01 : f32
    %72 = vector.broadcast %cst_37 : f32 to vector<1x16xf32>
    %73 = arith.mulf %72, %71 : vector<1x16xf32>
    %74 = arith.subf %36, %73 : vector<1x16xf32>
    %75 = vector.shape_cast %74 : vector<1x16xf32> to vector<1x1x16xf32>
    %cst_38 = arith.constant dense<0.000000e+00> : vector<1xf32>
    %76 = vector.multi_reduction <add>, %75, %cst_38 [1, 2] : vector<1x1x16xf32> to vector<1xf32>
    %77 = vector.shape_cast %76 : vector<1xf32> to vector<1x1x1xf32>
    %78 = vector.extract %77[0, 0, 0] : f32 from vector<1x1x1xf32>
    %cst_39 = arith.constant 0.000000e+00 : f32
    %79 = arith.addf %cst_39, %78 : f32
    %c1 = arith.constant 1 : index
    %c0_40 = arith.constant 0 : index
    %c0_41 = arith.constant 0 : index
    %80 = vector.load %arg1[%c1, %c0_40, %c0_41] : memref<3x16x32xf32, #tpu.memory_space<vmem>>, vector<1x16x32xf32>
    %81 = vector.shape_cast %80 : vector<1x16x32xf32> to vector<16x32xf32>
    %cst_42 = arith.constant dense<0.000000e+00> : vector<8x32xf32>
    %82 = tpu.matmul %68, %81, %cst_42 {dimension_numbers = #tpu.dot_dimension_numbers<[1], [0], [0], [1], [0, 0, 1, 1], [], []>} : vector<8x16xf32>, vector<16x32xf32>, vector<8x32xf32> -> vector<8x32xf32>
    %c1_43 = arith.constant 1 : index
    %c0_44 = arith.constant 0 : index
    %c0_45 = arith.constant 0 : index
    %83 = vector.load %arg2[%c1_43, %c0_44, %c0_45] : memref<3x1x32xf32, #tpu.memory_space<vmem>>, vector<1x1x32xf32>
    %84 = vector.shape_cast %83 : vector<1x1x32xf32> to vector<1x32xf32>
    %85 = vector.broadcast %84 : vector<1x32xf32> to vector<8x32xf32>
    %86 = arith.addf %82, %85 : vector<8x32xf32>
    %cst_46 = arith.constant 0.000000e+00 : f32
    %87 = vector.broadcast %cst_46 : f32 to vector<8x32xf32>
    %88 = arith.maximumf %86, %87 : vector<8x32xf32>
    %c1_47 = arith.constant 1 : index
    %c0_48 = arith.constant 0 : index
    %c0_49 = arith.constant 0 : index
    %89 = vector.load %arg3[%c1_47, %c0_48, %c0_49] : memref<3x32x32xf32, #tpu.memory_space<vmem>>, vector<1x32x32xf32>
    %90 = vector.shape_cast %89 : vector<1x32x32xf32> to vector<32x32xf32>
    %cst_50 = arith.constant dense<0.000000e+00> : vector<8x32xf32>
    %91 = tpu.matmul %88, %90, %cst_50 {dimension_numbers = #tpu.dot_dimension_numbers<[1], [0], [0], [1], [0, 0, 1, 1], [], []>} : vector<8x32xf32>, vector<32x32xf32>, vector<8x32xf32> -> vector<8x32xf32>
    %c1_51 = arith.constant 1 : index
    %c0_52 = arith.constant 0 : index
    %c0_53 = arith.constant 0 : index
    %92 = vector.load %arg4[%c1_51, %c0_52, %c0_53] : memref<3x1x32xf32, #tpu.memory_space<vmem>>, vector<1x1x32xf32>
    %93 = vector.shape_cast %92 : vector<1x1x32xf32> to vector<1x32xf32>
    %94 = vector.broadcast %93 : vector<1x32xf32> to vector<8x32xf32>
    %95 = arith.addf %91, %94 : vector<8x32xf32>
    %cst_54 = arith.constant 0.000000e+00 : f32
    %96 = vector.broadcast %cst_54 : f32 to vector<8x32xf32>
    %97 = arith.maximumf %95, %96 : vector<8x32xf32>
    %c1_55 = arith.constant 1 : index
    %c0_56 = arith.constant 0 : index
    %c0_57 = arith.constant 0 : index
    %98 = vector.load %arg7[%c1_55, %c0_56, %c0_57] : memref<3x5x16xf32, #tpu.memory_space<vmem>>, vector<1x5x16xf32>
    %99 = vector.shape_cast %98 : vector<1x5x16xf32> to vector<5x16xf32>
    %c1_58 = arith.constant 1 : index
    %c0_59 = arith.constant 0 : index
    %c0_60 = arith.constant 0 : index
    %100 = vector.load %arg5[%c1_58, %c0_59, %c0_60] : memref<3x32x16xf32, #tpu.memory_space<vmem>>, vector<1x32x16xf32>
    %101 = vector.shape_cast %100 : vector<1x32x16xf32> to vector<32x16xf32>
    %cst_61 = arith.constant dense<0.000000e+00> : vector<8x16xf32>
    %102 = tpu.matmul %97, %101, %cst_61 {dimension_numbers = #tpu.dot_dimension_numbers<[1], [0], [0], [1], [0, 0, 1, 1], [], []>} : vector<8x32xf32>, vector<32x16xf32>, vector<8x16xf32> -> vector<8x16xf32>
    %103 = vector.extract_strided_slice %99 {offsets = [0, 0], sizes = [1, 16], strides = [1, 1]} : vector<5x16xf32> to vector<1x16xf32>
    %104 = vector.broadcast %103 : vector<1x16xf32> to vector<8x16xf32>
    %105 = arith.addf %102, %104 : vector<8x16xf32>
    %c1_62 = arith.constant 1 : index
    %c0_63 = arith.constant 0 : index
    %c0_64 = arith.constant 0 : index
    %106 = vector.load %arg6[%c1_62, %c0_63, %c0_64] : memref<3x32x16xf32, #tpu.memory_space<vmem>>, vector<1x32x16xf32>
    %107 = vector.shape_cast %106 : vector<1x32x16xf32> to vector<32x16xf32>
    %cst_65 = arith.constant dense<0.000000e+00> : vector<8x16xf32>
    %108 = tpu.matmul %97, %107, %cst_65 {dimension_numbers = #tpu.dot_dimension_numbers<[1], [0], [0], [1], [0, 0, 1, 1], [], []>} : vector<8x32xf32>, vector<32x16xf32>, vector<8x16xf32> -> vector<8x16xf32>
    %109 = vector.extract_strided_slice %99 {offsets = [1, 0], sizes = [1, 16], strides = [1, 1]} : vector<5x16xf32> to vector<1x16xf32>
    %110 = vector.broadcast %109 : vector<1x16xf32> to vector<8x16xf32>
    %111 = arith.addf %108, %110 : vector<8x16xf32>
    %112 = vector.extract_strided_slice %99 {offsets = [2, 0], sizes = [1, 16], strides = [1, 1]} : vector<5x16xf32> to vector<1x16xf32>
    %113 = vector.extract_strided_slice %99 {offsets = [3, 0], sizes = [1, 16], strides = [1, 1]} : vector<5x16xf32> to vector<1x16xf32>
    %114 = vector.extract_strided_slice %99 {offsets = [4, 0], sizes = [1, 16], strides = [1, 1]} : vector<5x16xf32> to vector<1x16xf32>
    %115 = arith.subf %68, %105 : vector<8x16xf32>
    %cst_66 = arith.constant 5.000000e-01 : f32
    %116 = vector.broadcast %cst_66 : f32 to vector<8x16xf32>
    %117 = arith.mulf %116, %111 : vector<8x16xf32>
    %118 = math.exp %117 : vector<8x16xf32>
    %119 = arith.mulf %115, %118 : vector<8x16xf32>
    %cst_67 = arith.constant dense<0.000000e+00> : vector<8xf32>
    %120 = vector.multi_reduction <add>, %111, %cst_67 [1] : vector<8x16xf32> to vector<8xf32>
    %121 = vector.shape_cast %120 : vector<8xf32> to vector<8x1xf32>
    %cst_68 = arith.constant 5.000000e-01 : f32
    %122 = vector.broadcast %cst_68 : f32 to vector<8x1xf32>
    %123 = arith.mulf %122, %121 : vector<8x1xf32>
    %124 = arith.addf %46, %123 : vector<8x1xf32>
    %cst_69 = arith.constant dense<0.000000e+00> : vector<16xf32>
    %125 = vector.multi_reduction <add>, %119, %cst_69 [0] : vector<8x16xf32> to vector<16xf32>
    %126 = vector.shape_cast %125 : vector<16xf32> to vector<1x16xf32>
    %127 = arith.mulf %119, %119 : vector<8x16xf32>
    %cst_70 = arith.constant dense<0.000000e+00> : vector<16xf32>
    %128 = vector.multi_reduction <add>, %127, %cst_70 [0] : vector<8x16xf32> to vector<16xf32>
    %129 = vector.shape_cast %128 : vector<16xf32> to vector<1x16xf32>
    %cst_71 = arith.constant 1.250000e-01 : f32
    %130 = vector.broadcast %cst_71 : f32 to vector<1x16xf32>
    %131 = arith.mulf %126, %130 : vector<1x16xf32>
    %132 = arith.mulf %126, %131 : vector<1x16xf32>
    %133 = arith.subf %129, %132 : vector<1x16xf32>
    %cst_72 = arith.constant 0.142857149 : f32
    %134 = vector.broadcast %cst_72 : f32 to vector<1x16xf32>
    %135 = arith.mulf %133, %134 : vector<1x16xf32>
    %cst_73 = arith.constant 9.99999974E-6 : f32
    %136 = vector.broadcast %cst_73 : f32 to vector<1x16xf32>
    %137 = arith.addf %135, %136 : vector<1x16xf32>
    %138 = math.rsqrt %137 : vector<1x16xf32>
    %139 = vector.broadcast %131 : vector<1x16xf32> to vector<8x16xf32>
    %140 = arith.subf %119, %139 : vector<8x16xf32>
    %141 = vector.broadcast %112 : vector<1x16xf32> to vector<8x16xf32>
    %142 = arith.mulf %141, %140 : vector<8x16xf32>
    %143 = vector.broadcast %138 : vector<1x16xf32> to vector<8x16xf32>
    %144 = arith.mulf %142, %143 : vector<8x16xf32>
    %145 = vector.broadcast %113 : vector<1x16xf32> to vector<8x16xf32>
    %146 = arith.addf %144, %145 : vector<8x16xf32>
    %cst_74 = arith.constant 9.99999974E-6 : f32
    %147 = vector.broadcast %cst_74 : f32 to vector<1x16xf32>
    %148 = arith.addf %135, %147 : vector<1x16xf32>
    %149 = math.log %148 : vector<1x16xf32>
    %cst_75 = arith.constant 5.000000e-01 : f32
    %150 = vector.broadcast %cst_75 : f32 to vector<1x16xf32>
    %151 = arith.mulf %150, %149 : vector<1x16xf32>
    %152 = arith.subf %114, %151 : vector<1x16xf32>
    %153 = vector.shape_cast %152 : vector<1x16xf32> to vector<1x1x16xf32>
    %cst_76 = arith.constant dense<0.000000e+00> : vector<1xf32>
    %154 = vector.multi_reduction <add>, %153, %cst_76 [1, 2] : vector<1x1x16xf32> to vector<1xf32>
    %155 = vector.shape_cast %154 : vector<1xf32> to vector<1x1x1xf32>
    %156 = vector.extract %155[0, 0, 0] : f32 from vector<1x1x1xf32>
    %157 = arith.addf %79, %156 : f32
    %c2 = arith.constant 2 : index
    %c0_77 = arith.constant 0 : index
    %c0_78 = arith.constant 0 : index
    %158 = vector.load %arg1[%c2, %c0_77, %c0_78] : memref<3x16x32xf32, #tpu.memory_space<vmem>>, vector<1x16x32xf32>
    %159 = vector.shape_cast %158 : vector<1x16x32xf32> to vector<16x32xf32>
    %cst_79 = arith.constant dense<0.000000e+00> : vector<8x32xf32>
    %160 = tpu.matmul %146, %159, %cst_79 {dimension_numbers = #tpu.dot_dimension_numbers<[1], [0], [0], [1], [0, 0, 1, 1], [], []>} : vector<8x16xf32>, vector<16x32xf32>, vector<8x32xf32> -> vector<8x32xf32>
    %c2_80 = arith.constant 2 : index
    %c0_81 = arith.constant 0 : index
    %c0_82 = arith.constant 0 : index
    %161 = vector.load %arg2[%c2_80, %c0_81, %c0_82] : memref<3x1x32xf32, #tpu.memory_space<vmem>>, vector<1x1x32xf32>
    %162 = vector.shape_cast %161 : vector<1x1x32xf32> to vector<1x32xf32>
    %163 = vector.broadcast %162 : vector<1x32xf32> to vector<8x32xf32>
    %164 = arith.addf %160, %163 : vector<8x32xf32>
    %cst_83 = arith.constant 0.000000e+00 : f32
    %165 = vector.broadcast %cst_83 : f32 to vector<8x32xf32>
    %166 = arith.maximumf %164, %165 : vector<8x32xf32>
    %c2_84 = arith.constant 2 : index
    %c0_85 = arith.constant 0 : index
    %c0_86 = arith.constant 0 : index
    %167 = vector.load %arg3[%c2_84, %c0_85, %c0_86] : memref<3x32x32xf32, #tpu.memory_space<vmem>>, vector<1x32x32xf32>
    %168 = vector.shape_cast %167 : vector<1x32x32xf32> to vector<32x32xf32>
    %cst_87 = arith.constant dense<0.000000e+00> : vector<8x32xf32>
    %169 = tpu.matmul %166, %168, %cst_87 {dimension_numbers = #tpu.dot_dimension_numbers<[1], [0], [0], [1], [0, 0, 1, 1], [], []>} : vector<8x32xf32>, vector<32x32xf32>, vector<8x32xf32> -> vector<8x32xf32>
    %c2_88 = arith.constant 2 : index
    %c0_89 = arith.constant 0 : index
    %c0_90 = arith.constant 0 : index
    %170 = vector.load %arg4[%c2_88, %c0_89, %c0_90] : memref<3x1x32xf32, #tpu.memory_space<vmem>>, vector<1x1x32xf32>
    %171 = vector.shape_cast %170 : vector<1x1x32xf32> to vector<1x32xf32>
    %172 = vector.broadcast %171 : vector<1x32xf32> to vector<8x32xf32>
    %173 = arith.addf %169, %172 : vector<8x32xf32>
    %cst_91 = arith.constant 0.000000e+00 : f32
    %174 = vector.broadcast %cst_91 : f32 to vector<8x32xf32>
    %175 = arith.maximumf %173, %174 : vector<8x32xf32>
    %c2_92 = arith.constant 2 : index
    %c0_93 = arith.constant 0 : index
    %c0_94 = arith.constant 0 : index
    %176 = vector.load %arg7[%c2_92, %c0_93, %c0_94] : memref<3x5x16xf32, #tpu.memory_space<vmem>>, vector<1x5x16xf32>
    %177 = vector.shape_cast %176 : vector<1x5x16xf32> to vector<5x16xf32>
    %c2_95 = arith.constant 2 : index
    %c0_96 = arith.constant 0 : index
    %c0_97 = arith.constant 0 : index
    %178 = vector.load %arg5[%c2_95, %c0_96, %c0_97] : memref<3x32x16xf32, #tpu.memory_space<vmem>>, vector<1x32x16xf32>
    %179 = vector.shape_cast %178 : vector<1x32x16xf32> to vector<32x16xf32>
    %cst_98 = arith.constant dense<0.000000e+00> : vector<8x16xf32>
    %180 = tpu.matmul %175, %179, %cst_98 {dimension_numbers = #tpu.dot_dimension_numbers<[1], [0], [0], [1], [0, 0, 1, 1], [], []>} : vector<8x32xf32>, vector<32x16xf32>, vector<8x16xf32> -> vector<8x16xf32>
    %181 = vector.extract_strided_slice %177 {offsets = [0, 0], sizes = [1, 16], strides = [1, 1]} : vector<5x16xf32> to vector<1x16xf32>
    %182 = vector.broadcast %181 : vector<1x16xf32> to vector<8x16xf32>
    %183 = arith.addf %180, %182 : vector<8x16xf32>
    %c2_99 = arith.constant 2 : index
    %c0_100 = arith.constant 0 : index
    %c0_101 = arith.constant 0 : index
    %184 = vector.load %arg6[%c2_99, %c0_100, %c0_101] : memref<3x32x16xf32, #tpu.memory_space<vmem>>, vector<1x32x16xf32>
    %185 = vector.shape_cast %184 : vector<1x32x16xf32> to vector<32x16xf32>
    %cst_102 = arith.constant dense<0.000000e+00> : vector<8x16xf32>
    %186 = tpu.matmul %175, %185, %cst_102 {dimension_numbers = #tpu.dot_dimension_numbers<[1], [0], [0], [1], [0, 0, 1, 1], [], []>} : vector<8x32xf32>, vector<32x16xf32>, vector<8x16xf32> -> vector<8x16xf32>
    %187 = vector.extract_strided_slice %177 {offsets = [1, 0], sizes = [1, 16], strides = [1, 1]} : vector<5x16xf32> to vector<1x16xf32>
    %188 = vector.broadcast %187 : vector<1x16xf32> to vector<8x16xf32>
    %189 = arith.addf %186, %188 : vector<8x16xf32>
    %190 = vector.extract_strided_slice %177 {offsets = [2, 0], sizes = [1, 16], strides = [1, 1]} : vector<5x16xf32> to vector<1x16xf32>
    %191 = vector.extract_strided_slice %177 {offsets = [3, 0], sizes = [1, 16], strides = [1, 1]} : vector<5x16xf32> to vector<1x16xf32>
    %192 = vector.extract_strided_slice %177 {offsets = [4, 0], sizes = [1, 16], strides = [1, 1]} : vector<5x16xf32> to vector<1x16xf32>
    %193 = arith.subf %146, %183 : vector<8x16xf32>
    %cst_103 = arith.constant 5.000000e-01 : f32
    %194 = vector.broadcast %cst_103 : f32 to vector<8x16xf32>
    %195 = arith.mulf %194, %189 : vector<8x16xf32>
    %196 = math.exp %195 : vector<8x16xf32>
    %197 = arith.mulf %193, %196 : vector<8x16xf32>
    %cst_104 = arith.constant dense<0.000000e+00> : vector<8xf32>
    %198 = vector.multi_reduction <add>, %189, %cst_104 [1] : vector<8x16xf32> to vector<8xf32>
    %199 = vector.shape_cast %198 : vector<8xf32> to vector<8x1xf32>
    %cst_105 = arith.constant 5.000000e-01 : f32
    %200 = vector.broadcast %cst_105 : f32 to vector<8x1xf32>
    %201 = arith.mulf %200, %199 : vector<8x1xf32>
    %202 = arith.addf %124, %201 : vector<8x1xf32>
    %cst_106 = arith.constant dense<0.000000e+00> : vector<16xf32>
    %203 = vector.multi_reduction <add>, %197, %cst_106 [0] : vector<8x16xf32> to vector<16xf32>
    %204 = vector.shape_cast %203 : vector<16xf32> to vector<1x16xf32>
    %205 = arith.mulf %197, %197 : vector<8x16xf32>
    %cst_107 = arith.constant dense<0.000000e+00> : vector<16xf32>
    %206 = vector.multi_reduction <add>, %205, %cst_107 [0] : vector<8x16xf32> to vector<16xf32>
    %207 = vector.shape_cast %206 : vector<16xf32> to vector<1x16xf32>
    %cst_108 = arith.constant 1.250000e-01 : f32
    %208 = vector.broadcast %cst_108 : f32 to vector<1x16xf32>
    %209 = arith.mulf %204, %208 : vector<1x16xf32>
    %210 = arith.mulf %204, %209 : vector<1x16xf32>
    %211 = arith.subf %207, %210 : vector<1x16xf32>
    %cst_109 = arith.constant 0.142857149 : f32
    %212 = vector.broadcast %cst_109 : f32 to vector<1x16xf32>
    %213 = arith.mulf %211, %212 : vector<1x16xf32>
    %cst_110 = arith.constant 9.99999974E-6 : f32
    %214 = vector.broadcast %cst_110 : f32 to vector<1x16xf32>
    %215 = arith.addf %213, %214 : vector<1x16xf32>
    %216 = math.rsqrt %215 : vector<1x16xf32>
    %217 = vector.broadcast %209 : vector<1x16xf32> to vector<8x16xf32>
    %218 = arith.subf %197, %217 : vector<8x16xf32>
    %219 = vector.broadcast %190 : vector<1x16xf32> to vector<8x16xf32>
    %220 = arith.mulf %219, %218 : vector<8x16xf32>
    %221 = vector.broadcast %216 : vector<1x16xf32> to vector<8x16xf32>
    %222 = arith.mulf %220, %221 : vector<8x16xf32>
    %223 = vector.broadcast %191 : vector<1x16xf32> to vector<8x16xf32>
    %224 = arith.addf %222, %223 : vector<8x16xf32>
    %cst_111 = arith.constant 9.99999974E-6 : f32
    %225 = vector.broadcast %cst_111 : f32 to vector<1x16xf32>
    %226 = arith.addf %213, %225 : vector<1x16xf32>
    %227 = math.log %226 : vector<1x16xf32>
    %cst_112 = arith.constant 5.000000e-01 : f32
    %228 = vector.broadcast %cst_112 : f32 to vector<1x16xf32>
    %229 = arith.mulf %228, %227 : vector<1x16xf32>
    %230 = arith.subf %192, %229 : vector<1x16xf32>
    %231 = vector.shape_cast %230 : vector<1x16xf32> to vector<1x1x16xf32>
    %cst_113 = arith.constant dense<0.000000e+00> : vector<1xf32>
    %232 = vector.multi_reduction <add>, %231, %cst_113 [1, 2] : vector<1x1x16xf32> to vector<1xf32>
    %233 = vector.shape_cast %232 : vector<1xf32> to vector<1x1x1xf32>
    %234 = vector.extract %233[0, 0, 0] : f32 from vector<1x1x1xf32>
    %235 = arith.addf %157, %234 : f32
    %c0_114 = arith.constant 0 : index
    %c0_115 = arith.constant 0 : index
    %236 = vector.load %arg8[%c0_114, %c0_115] : memref<8x16xf32, #tpu.memory_space<vmem>>, vector<8x16xf32>
    tpu.vector_store %arg8[%c0_114, %c0_115], %224 {strides = array<i32>} : memref<8x16xf32, #tpu.memory_space<vmem>>, vector<8x16xf32>,
    %237 = vector.broadcast %235 : f32 to vector<8x1xf32>
    %238 = arith.addf %202, %237 : vector<8x1xf32>
    %c0_116 = arith.constant 0 : index
    %c0_117 = arith.constant 0 : index
    %239 = vector.load %arg9[%c0_116, %c0_117] : memref<8x1xf32, #tpu.memory_space<vmem>>, vector<8x1xf32>
    tpu.vector_store %arg9[%c0_116, %c0_117], %238 {strides = array<i32>} : memref<8x1xf32, #tpu.memory_space<vmem>>, vector<8x1xf32>,
    return
  }
}

</mosaic_0001>

<bundles_post_ra>
// kernel: _maf_forward_impl.1
= control target key start
LH: loop header
LB: loop body
LE: loop exit
PB: predicated region body
PF: predicated region fallthrough
CT: control target
= control target key end

     0   :  { %v1481_v0 = vmov 0.0   ;;  %vm1482_vm0 = vmmov 0   ;;  %vm41_vm1 = vcmask 130048   ;;  %vm127_vm2 = vcmask 261120   ;;  %s1822_s1 = inlined_call_operand.vmem [shape: f32[3,16,32], index: 1, kind: input, shape index: {}]   ;;  %s1823_s0 = inlined_call_operand.vmem [shape: f32[8,16], index: 0, kind: input, shape index: {}]   ;;  %s1824_s3 = inlined_call_operand.vmem [shape: f32[3,32,32], index: 3, kind: input, shape index: {}]   ;;  %s1825_s5 = inlined_call_operand.vmem [shape: f32[3,32,16], index: 5, kind: input, shape index: {}]   ;;  %s1826_s2 = inlined_call_operand.vmem [shape: f32[3,1,32], index: 2, kind: input, shape index: {}]   ;;  %s1827_s6 = inlined_call_operand.vmem [shape: f32[3,32,16], index: 6, kind: input, shape index: {}]   ;;  %s1828_s4 = inlined_call_operand.vmem [shape: f32[3,1,32], index: 4, kind: input, shape index: {}]   ;;  %s1829_s7 = inlined_call_operand.vmem [shape: f32[3,5,16], index: 7, kind: input, shape index: {}]   ;;  %s1830_s8 = inlined_call_operand.vmem [shape: f32[8,16], index: 8, kind: output, shape index: {0}]   ;;  %s1831_s9 = inlined_call_operand.vmem [shape: f32[8,1], index: 9, kind: output, shape index: {1}]  }
   0x1   :  { %1335 = vmatprep.subr.mxu0 %v1481_v0  ;;  %v33_v1 = vld [vmem:[%s1822_s1 + $0x8] sm:$0xff]  ;;  %v32_v2 = vld [vmem:[%s1822_s1] sm:$0xff]  ;;  %1339 = vmatprep.mubr.msk.f32.mxu0 %vm1482_vm0, %v1481_v0  ;;  %v119_v4 = vld [vmem:[%s1824_s3 + $0x18] sm:$0xff]  ;;  %v207_v28 = vlaneseq  ;;  %vm412_vm3 = vcmask 122880   ;;  %vm1219_vm4 = vcmask 7168  }
   0x2   :  { %1336 = vmatpush3.msra.mxu0 %v33_v1  ;;  %v1545_v3 = vld [vmem:[%s1823_s0] sm:$0xff]  ;;  %1342 = vmatprep.subr.mxu1 %v1481_v0  ;;  %v118_v5 = vld [vmem:[%s1824_s3 + $0x10] sm:$0xff]  ;;  %v117_v6 = vld [vmem:[%s1824_s3 + $0x8] sm:$0xff] }
   0x3   :  { %1337 = vmatprep.subr.mxu0 %v1481_v0  ;;  %1343 = vmatpush3.msra.mxu1 %v119_v4  ;;  %v116_v7 = vld [vmem:[%s1824_s3] sm:$0xff]  ;;  %v206_v8 = vld [vmem:[%s1825_s5 + $0x18] sm:$0xff]  ;;  %v205_v15 = vld [vmem:[%s1825_s5 + $0x10] sm:$0xff]  ;;  %v208_v29 = vshrl.u32 %v207_v28, 7 }
   0x4   :  { %1338 = vmatpush3.msra.mxu0 %v32_v2  ;;  %1344 = vmatprep.subr.mxu1 %v1481_v0  ;;  %v1229_v9 = vld [vmem:[%s1826_s2] ss:$0 sm:$0xff]  ;;  %v287_v14 = vld [vmem:[%s1827_s6 + $0x18] sm:$0xff]  ;;  %v286_v16 = vld [vmem:[%s1827_s6 + $0x10] sm:$0xff] }
   0x5   :  { %1340 = vmatmul.mubr.msk.f32.vlgmr.msra.gmra.mxu0 %vm41_vm1, %v1545_v3  ;;  %1350 = vmatprep.mubr.msk.f32.mxu1 %vm1482_vm0, %v1481_v0  ;;  %v204_v17 = vld [vmem:[%s1825_s5 + $0x8] sm:$0xff]  ;;  %v203_v19 = vld [vmem:[%s1825_s5] sm:$0xff]  ;;  %v1236_v26 = vld [vmem:[%s1822_s1 + $0x18] sm:$0xff]  ;;  %v1627_v30 = vsub.s32 1, %v208_v29  ;;  %v1636_v40 = vsub.s32 0, %v208_v29 }
   0x6   :  { %1353 = vmatprep.subr.mxu0 %v1481_v0  ;;  %1361 = vmatprep.mubr.msk.f32.mxu0 %vm1482_vm0, %v1481_v0  ;;  %v285_v18 = vld [vmem:[%s1827_s6 + $0x8] sm:$0xff]  ;;  %v284_v20 = vld [vmem:[%s1827_s6] sm:$0xff]  ;;  %v1235_v27 = vld [vmem:[%s1822_s1 + $0x10] sm:$0xff] }
   0x7   :  { %1345 = vmatpush3.msra.mxu1 %v118_v5  ;;  %1354 = vmatpush3.msra.mxu0 %v206_v8  ;;  %v1231_v21 = vld [vmem:[%s1828_s4] ss:$0 sm:$0xff] }
   0x8   :  { %1346 = vmatprep.subr.mxu1 %v1481_v0  ;;  %1355 = vmatprep.subr.mxu0 %v1481_v0  ;;  %v202_v31 = vld [vmem:[%s1829_s7] sm:$0x1f] }
   0x9   :  { %1347 = vmatpush3.msra.mxu1 %v117_v6  ;;  %1356 = vmatpush3.msra.mxu0 %v205_v15  ;;  %v291_v32 = vrot.slane %v202_v31, %v1627_v30  ;;  %v210_v41 = vrot.slane %v202_v31, %v1636_v40  ;;  %v1645_v6 = vsub.s32 3, %v208_v29 }
   0xa   :  { %1348 = vmatprep.subr.mxu1 %v1481_v0  ;;  %1357 = vmatprep.subr.mxu0 %v1481_v0 }
   0xb   :  { %1349 = vmatpush3.msra.mxu1 %v116_v7  ;;  %1358 = vmatpush3.msra.mxu0 %v204_v17  ;;  %v403_v8 = vrot.slane %v202_v31, %v1645_v6 }
   0xc   :  { %1364 = vmatprep.subr.mxu1 %v1481_v0  ;;  %1359 = vmatprep.subr.mxu0 %v1481_v0 }
   0xd   :  { %1360 = vmatpush3.msra.mxu0 %v203_v19  ;;  %v1242_v19 = vld [vmem:[%s1824_s3 + $0x30] sm:$0xff] }
   0xe   :  { %1375 = vmatprep.subr.mxu0 %v1481_v0 }
  0xc5   :  { %v111_v10 = vpop.f32.mrf.mxu0 }
  0xc6   :  { %v112_v11 = vadd.f32 %v1229_v9, %v111_v10 }
  0xc7   :  { %v1341_v12 = vpop.f32.mrf.mxu0 }
  0xc8   :  { %v115_v13 = vmax.f32 %v112_v11, 0.0 }
  0xca   :  { %1351 = vmatmul.mubr.msk.f32.vlgmr.msra.gmra.mxu1 %vm127_vm2, %v115_v13 }
  0xcb   :  { %1365 = vmatpush3.msra.mxu1 %v287_v14  ;;  %1372 = vmatprep.mubr.msk.f32.mxu1 %vm1482_vm0, %v1481_v0 }
  0xcc   :  { %1366 = vmatprep.subr.mxu1 %v1481_v0 }
  0xcd   :  { %1367 = vmatpush3.msra.mxu1 %v286_v16 }
  0xce   :  { %1368 = vmatprep.subr.mxu1 %v1481_v0 }
  0xcf   :  { %1369 = vmatpush3.msra.mxu1 %v285_v18  ;;  %v1243_v18 = vld [vmem:[%s1824_s3 + $0x38] sm:$0xff] }
  0xd0   :  { %1370 = vmatprep.subr.mxu1 %v1481_v0 }
  0xd1   :  { %1371 = vmatpush3.msra.mxu1 %v284_v20  ;;  %v1241_v20 = vld [vmem:[%s1824_s3 + $0x28] sm:$0xff] }
  0xd2   :  { %1393 = vmatprep.subr.mxu1 %v1481_v0 }
 0x18a   :  { %v197_v22 = vpop.f32.mrf.mxu1 }
 0x18b   :  { %v198_v23 = vadd.f32 %v1231_v21, %v197_v22  ;;  %v1240_v21 = vld [vmem:[%s1824_s3 + $0x20] sm:$0xff]  ;;  %v1251_v22 = vld [vmem:[%s1825_s5 + $0x38] sm:$0xff] }
 0x18c   :  { %v1352_v24 = vpop.f32.mrf.mxu1 }
 0x18d   :  { %v201_v25 = vmax.f32 %v198_v23, 0.0 }
 0x18f   :  { %1362 = vmatmul.mubr.msk.f32.vlgmr.msra.gmra.mxu0 %vm127_vm2, %v201_v25  ;;  %1373 = vmatmul.mubr.msk.f32.vlgmr.msra.gmra.mxu1 %vm127_vm2, %v201_v25 }
 0x190   :  { %1379 = vmatprep.mubr.msk.f32.mxu0 %vm1482_vm0, %v1481_v0  ;;  %1401 = vmatprep.mubr.msk.f32.mxu1 %vm1482_vm0, %v1481_v0 }
 0x191   :  { %1376 = vmatpush3.msra.mxu0 %v1236_v26  ;;  %1394 = vmatpush3.msra.mxu1 %v1251_v22 }
 0x192   :  { %1377 = vmatprep.subr.mxu0 %v1481_v0  ;;  %1395 = vmatprep.subr.mxu1 %v1481_v0 }
 0x193   :  { %1378 = vmatpush3.msra.mxu0 %v1235_v27 }
 0x194   :  { %1382 = vmatprep.subr.mxu0 %v1481_v0 }
 0x24f   :  { %v280_v33 = vpop.f32.mrf.mxu0  ;;  %v358_v34 = vpop.f32.mrf.mxu1 }
 0x250   :  { %v1633_v35 = vadd.f32 %v358_v34, %v291_v32  ;;  %v281_v42 = vadd.f32 %v280_v33, %v210_v41  ;;  %v1249_v41 = vld [vmem:[%s1825_s5 + $0x28] sm:$0xff] }
 0x251   :  { %v1363_v36 = vpop.f32.mrf.mxu0  ;;  %v1374_v37 = vpop.f32.mrf.mxu1 }
 0x252   :  { %v363_v38 = vmul.f32 0.5, %v1633_v35  ;;  %v362_v43 = vsub.f32 %v1545_v3, %v281_v42  ;;  %v1642_v3 = vsub.s32 2, %v208_v29  ;;  %v1256_v37 = vld [vmem:[%s1827_s6 + $0x38] sm:$0xff]  ;;  %v1254_v42 = vld [vmem:[%s1827_s6 + $0x28] sm:$0xff] }
 0x254   :  { %v364_v39 = vmul.f32 1.442695, %v363_v38  ;;  %v397_v4 = vrot.slane %v202_v31, %v1642_v3  ;;  %v1250_v38 = vld [vmem:[%s1825_s5 + $0x30] sm:$0xff] }
 0x255   :  { %1396 = vmatpush3.msra.mxu1 %v1250_v38 }
 0x256   :  { %1463 = vpow2.f32 %v364_v39  ;;  %v1255_v39 = vld [vmem:[%s1827_s6 + $0x30] sm:$0xff]  ;;  %1397 = vmatprep.subr.mxu1 %v1481_v0 }
 0x257   :  { %1398 = vmatpush3.msra.mxu1 %v1249_v41 }
 0x258   :  { %1399 = vmatprep.subr.mxu1 %v1481_v0 }
 0x263   :  { %v1464_v44 = vpop.eup %1463 }
 0x264   :  { %v366_v45 = vmul.f32 %v1464_v44, %v362_v43  ;;  %v1248_v43 = vld [vmem:[%s1825_s5 + $0x20] sm:$0xff] }
 0x265   :  { %v1253_v44 = vld [vmem:[%s1827_s6 + $0x20] sm:$0xff]  ;;  %1400 = vmatpush3.msra.mxu1 %v1248_v43  ;;  %v1265_v43 = vld [vmem:[%s1824_s3 + $0x50] sm:$0xff] }
 0x266   :  { %v372_v46 = vsel %vm41_vm1, %v366_v45, 0.0  ;;  %v379_v47 = vmul.f32 %v366_v45, %v366_v45  ;;  %1415 = vmatprep.subr.mxu1 %v1481_v0 }
 0x267   :  { %v373_v48 = vrot.slane %v372_v46, 4 }
 0x268   :  { %v380_v49 = vsel %vm41_vm1, %v379_v47, 0.0 }
 0x269   :  { %v374_v50 = vadd.f32 %v373_v48, %v372_v46  ;;  %v381_v51 = vrot.slane %v380_v49, 4 }
 0x26b   :  { %v375_v52 = vrot.slane %v374_v50, 2  ;;  %v382_v53 = vadd.f32 %v381_v51, %v380_v49  ;;  %v1258_v51 = vld [vmem:[%s1822_s1 + $0x20] sm:$0xff] }
 0x26d   :  { %v383_v54 = vrot.slane %v382_v53, 2  ;;  %v376_v55 = vadd.f32 %v375_v52, %v374_v50  ;;  %v1259_v50 = vld [vmem:[%s1822_s1 + $0x28] sm:$0xff] }
 0x26e   :  { %v1247_v52 = vld [vmem:[%s1829_s7 + $0x8] sm:$0x1f] }
 0x26f   :  { %v384_v56 = vadd.f32 %v383_v54, %v382_v53  ;;  %v377_v57 = vrot.slane %v376_v55, 1  ;;  %v688_v53 = vrot.slane %v1247_v52, %v1627_v30 }
 0x271   :  { %v378_v58 = vadd.f32 %v377_v57, %v376_v55  ;;  %v385_v59 = vrot.slane %v384_v56, 1 }
 0x273   :  { %v387_v60 = vmul.f32 0.125, %v378_v58  ;;  %v386_v61 = vadd.f32 %v385_v59, %v384_v56 }
 0x275   :  { %v388_v62 = vmul.f32 %v387_v60, %v378_v58  ;;  %v393_v5 = vsub.f32 %v366_v45, %v387_v60  ;;  %v1245_v45 = vld [vmem:[%s1828_s4 + $0x1] ss:$0 sm:$0xff] }
 0x277   :  { %v389_v63 = vsub.f32 %v386_v61, %v388_v62  ;;  %v398_v7 = vmul.f32 %v397_v4, %v393_v5  ;;  %v606_v61 = vrot.slane %v1247_v52, %v1636_v40 }
 0x279   :  { %v390_v1 = vmul.f32 0.14285715, %v389_v63 }
 0x27b   :  { %v391_v2 = vadd.f32 1e-05, %v390_v1 }
 0x27d   :  { %1465 = vrsqrt.f32 %v391_v2 }
 0x27e   :  { %1467 = vlog2.f32 %v391_v2 }
 0x28a   :  { %v1466_v9 = vpop.eup %1465 }
 0x28b   :  { %v1468_v10 = vpop.eup %1467  ;;  %v399_v11 = vmul.f32 %v1466_v9, %v398_v7 }
 0x28c   :  { %v406_v12 = vmul.f32 0.6931472, %v1468_v10 }
 0x28d   :  { %v1648_v13 = vadd.f32 %v403_v8, %v399_v11 }
 0x28e   :  { %v407_v14 = vmul.f32 0.5, %v406_v12 }
 0x28f   :  { %1380 = vmatmul.mubr.msk.f32.vlgmr.msra.gmra.mxu0 %vm41_vm1, %v1648_v13 }
 0x290   :  { %v408_v15 = vsub.f32 %v202_v31, %v407_v14  ;;  %1390 = vmatprep.mubr.msk.f32.mxu0 %vm1482_vm0, %v1481_v0  ;;  %1383 = vmatpush3.msra.mxu0 %v1243_v18  ;;  %v1238_v31 = vld [vmem:[%s1826_s2 + $0x1] ss:$0 sm:$0xff] }
 0x291   :  { %1384 = vmatprep.subr.mxu0 %v1481_v0 }
 0x292   :  { %v410_v16 = vrot.slane %v408_v15, 4  ;;  %1385 = vmatpush3.msra.mxu0 %v1242_v19 }
 0x293   :  { %1386 = vmatprep.subr.mxu0 %v1481_v0 }
 0x294   :  { %v413_v17 = vsel %vm412_vm3, %v410_v16, 0.0  ;;  %1387 = vmatpush3.msra.mxu0 %v1241_v20 }
 0x295   :  { %414 = vadd.xlane.f32.xlu0 %v413_v17  ;;  %1388 = vmatprep.subr.mxu0 %v1481_v0 }
 0x296   :  { %1389 = vmatpush3.msra.mxu0 %v1240_v21 }
 0x297   :  { %1404 = vmatprep.subr.mxu0 %v1481_v0 }
 0x31e   :  { %v415_v23 = vpop.xlane.xlu0 %414 }
 0x31f   :  { %v416_v24 = vrot.slane %v415_v23, 4 }
 0x321   :  { %v417_v25 = vadd.f32 %v416_v24, %v415_v23 }
 0x323   :  { %v418_v26 = vrot.slane %v417_v25, 2 }
 0x325   :  { %v419_v27 = vadd.f32 %v418_v26, %v417_v25  ;;  %v794_v25 = vrot.slane %v1247_v52, %v1642_v3 }
 0x327   :  { %v420_v28 = vrot.slane %v419_v27, 1 }
 0x329   :  { %v421_v29 = vadd.f32 %v420_v28, %v419_v27  ;;  %v800_v28 = vrot.slane %v1247_v52, %v1645_v6 }
 0x32b   :  { %1455 = vpush %v421_v29 }
 0x34f   :  { %v504_v32 = vpop.f32.mrf.mxu0 }
 0x350   :  { %v505_v33 = vadd.f32 %v1238_v31, %v504_v32 }
 0x351   :  { %v1381_v34 = vpop.f32.mrf.mxu0 }
 0x352   :  { %v508_v36 = vmax.f32 %v505_v33, 0.0 }
 0x354   :  { %1391 = vmatmul.mubr.msk.f32.vlgmr.msra.gmra.mxu0 %vm127_vm2, %v508_v36 }
 0x355   :  { %1405 = vmatpush3.msra.mxu0 %v1256_v37  ;;  %1412 = vmatprep.mubr.msk.f32.mxu0 %vm1482_vm0, %v1481_v0 }
 0x356   :  { %1406 = vmatprep.subr.mxu0 %v1481_v0 }
 0x357   :  { %1407 = vmatpush3.msra.mxu0 %v1255_v39 }
 0x358   :  { %1408 = vmatprep.subr.mxu0 %v1481_v0 }
 0x359   :  { %1409 = vmatpush3.msra.mxu0 %v1254_v42  ;;  %v1266_v42 = vld [vmem:[%s1824_s3 + $0x58] sm:$0xff] }
 0x35a   :  { %1410 = vmatprep.subr.mxu0 %v1481_v0 }
 0x35b   :  { %1411 = vmatpush3.msra.mxu0 %v1253_v44  ;;  %v1264_v44 = vld [vmem:[%s1824_s3 + $0x48] sm:$0xff] }
 0x35c   :  { %1433 = vmatprep.subr.mxu0 %v1481_v0 }
 0x414   :  { %v591_v46 = vpop.f32.mrf.mxu0 }
 0x415   :  { %v592_v47 = vadd.f32 %v1245_v45, %v591_v46  ;;  %v1263_v45 = vld [vmem:[%s1824_s3 + $0x40] sm:$0xff]  ;;  %v1274_v46 = vld [vmem:[%s1825_s5 + $0x58] sm:$0xff] }
 0x416   :  { %v1392_v48 = vpop.f32.mrf.mxu0 }
 0x417   :  { %v595_v49 = vmax.f32 %v592_v47, 0.0 }
 0x419   :  { %1402 = vmatmul.mubr.msk.f32.vlgmr.msra.gmra.mxu1 %vm127_vm2, %v595_v49  ;;  %1413 = vmatmul.mubr.msk.f32.vlgmr.msra.gmra.mxu0 %vm127_vm2, %v595_v49 }
 0x41a   :  { %1419 = vmatprep.mubr.msk.f32.mxu1 %vm1482_vm0, %v1481_v0  ;;  %1441 = vmatprep.mubr.msk.f32.mxu0 %vm1482_vm0, %v1481_v0 }
 0x41b   :  { %1416 = vmatpush3.msra.mxu1 %v1259_v50  ;;  %1434 = vmatpush3.msra.mxu0 %v1274_v46 }
 0x41c   :  { %1417 = vmatprep.subr.mxu1 %v1481_v0  ;;  %1435 = vmatprep.subr.mxu0 %v1481_v0 }
 0x41d   :  { %1418 = vmatpush3.msra.mxu1 %v1258_v51 }
 0x41e   :  { %1422 = vmatprep.subr.mxu1 %v1481_v0 }
 0x4d9   :  { %v676_v54 = vpop.f32.mrf.mxu1  ;;  %v755_v55 = vpop.f32.mrf.mxu0 }
 0x4da   :  { %v756_v56 = vadd.f32 %v755_v55, %v688_v53  ;;  %v677_v62 = vadd.f32 %v676_v54, %v606_v61  ;;  %v1261_v54 = vld [vmem:[%s1826_s2 + $0x2] ss:$0 sm:$0xff]  ;;  %v1278_v61 = vld [vmem:[%s1827_s6 + $0x50] sm:$0xff] }
 0x4db   :  { %v1403_v57 = vpop.f32.mrf.mxu1  ;;  %v1414_v58 = vpop.f32.mrf.mxu0 }
 0x4dc   :  { %v760_v59 = vmul.f32 0.5, %v756_v56  ;;  %v759_v63 = vsub.f32 %v1648_v13, %v677_v62  ;;  %v764_v41 = vsel %vm41_vm1, %v756_v56, 0.0  ;;  %v1272_v62 = vld [vmem:[%s1825_s5 + $0x48] sm:$0xff] }
 0x4de   :  { %v761_v60 = vmul.f32 1.442695, %v760_v59  ;;  %v1279_v59 = vld [vmem:[%s1827_s6 + $0x58] sm:$0xff] }
 0x4e0   :  { %1469 = vpow2.f32 %v761_v60  ;;  %v1273_v60 = vld [vmem:[%s1825_s5 + $0x50] sm:$0xff] }
 0x4e1   :  { %1436 = vmatpush3.msra.mxu0 %v1273_v60 }
 0x4e2   :  { %1437 = vmatprep.subr.mxu0 %v1481_v0 }
 0x4e3   :  { %1438 = vmatpush3.msra.mxu0 %v1272_v62 }
 0x4e4   :  { %1439 = vmatprep.subr.mxu0 %v1481_v0 }
 0x4ed   :  { %v1470_v1 = vpop.eup %1469 }
 0x4ee   :  { %v763_v2 = vmul.f32 %v1470_v1, %v759_v63  ;;  %v1277_v63 = vld [vmem:[%s1827_s6 + $0x48] sm:$0xff]  ;;  %v1271_v1 = vld [vmem:[%s1825_s5 + $0x40] sm:$0xff] }
 0x4ef   :  { %1440 = vmatpush3.msra.mxu0 %v1271_v1 }
 0x4f0   :  { %v769_v4 = vsel %vm41_vm1, %v763_v2, 0.0  ;;  %v776_v5 = vmul.f32 %v763_v2, %v763_v2 }
 0x4f1   :  { %v770_v7 = vrot.slane %v769_v4, 4 }
 0x4f2   :  { %v777_v8 = vsel %vm41_vm1, %v776_v5, 0.0 }
 0x4f3   :  { %v771_v9 = vadd.f32 %v770_v7, %v769_v4  ;;  %v778_v10 = vrot.slane %v777_v8, 4  ;;  %v1268_v4 = vld [vmem:[%s1828_s4 + $0x2] ss:$0 sm:$0xff] }
 0x4f5   :  { %v772_v11 = vrot.slane %v771_v9, 2  ;;  %v779_v12 = vadd.f32 %v778_v10, %v777_v8  ;;  %v1270_v10 = vld [vmem:[%s1829_s7 + $0x10] sm:$0x1f] }
 0x4f7   :  { %v780_v14 = vrot.slane %v779_v12, 2  ;;  %v773_v15 = vadd.f32 %v772_v11, %v771_v9 }
 0x4f9   :  { %v781_v16 = vadd.f32 %v780_v14, %v779_v12  ;;  %v774_v17 = vrot.slane %v773_v15, 1 }
 0x4fb   :  { %v775_v18 = vadd.f32 %v774_v17, %v773_v15  ;;  %v782_v19 = vrot.slane %v781_v16, 1 }
 0x4fd   :  { %v784_v20 = vmul.f32 0.125, %v775_v18  ;;  %v783_v13 = vadd.f32 %v782_v19, %v781_v16  ;;  %v1002_v19 = vrot.slane %v1270_v10, %v1636_v40 }
 0x4ff   :  { %v785_v21 = vmul.f32 %v784_v20, %v775_v18  ;;  %v790_v26 = vsub.f32 %v763_v2, %v784_v20  ;;  %v1276_v2 = vld [vmem:[%s1827_s6 + $0x40] sm:$0xff] }
 0x501   :  { %v786_v22 = vsub.f32 %v783_v13, %v785_v21  ;;  %v795_v27 = vmul.f32 %v794_v25, %v790_v26 }
 0x503   :  { %v787_v23 = vmul.f32 0.14285715, %v786_v22 }
 0x505   :  { %v788_v24 = vadd.f32 1e-05, %v787_v23 }
 0x507   :  { %1471 = vrsqrt.f32 %v788_v24 }
 0x508   :  { %1473 = vlog2.f32 %v788_v24 }
 0x514   :  { %v1472_v29 = vpop.eup %1471 }
 0x515   :  { %v1474_v31 = vpop.eup %1473  ;;  %v796_v32 = vmul.f32 %v1472_v29, %v795_v27 }
 0x516   :  { %v803_v33 = vmul.f32 0.6931472, %v1474_v31 }
 0x517   :  { %v1736_v34 = vadd.f32 %v800_v28, %v796_v32 }
 0x518   :  { %v804_v36 = vmul.f32 0.5, %v803_v33 }
 0x519   :  { %1420 = vmatmul.mubr.msk.f32.vlgmr.msra.gmra.mxu1 %vm41_vm1, %v1736_v34 }
 0x51a   :  { %v805_v37 = vsub.f32 %v1247_v52, %v804_v36  ;;  %1430 = vmatprep.mubr.msk.f32.mxu1 %vm1482_vm0, %v1481_v0  ;;  %1423 = vmatpush3.msra.mxu1 %v1266_v42 }
 0x51b   :  { %1424 = vmatprep.subr.mxu1 %v1481_v0 }
 0x51c   :  { %v807_v38 = vrot.slane %v805_v37, 4  ;;  %1425 = vmatpush3.msra.mxu1 %v1265_v43 }
 0x51d   :  { %1426 = vmatprep.subr.mxu1 %v1481_v0 }
 0x51e   :  { %v809_v39 = vsel %vm412_vm3, %v807_v38, 0.0  ;;  %1427 = vmatpush3.msra.mxu1 %v1264_v44  ;;  %v1190_v44 = vrot.slane %v1270_v10, %v1642_v3  ;;  %v367_v3 = vsel %vm41_vm1, %v1633_v35, 0.0 }
 0x51f   :  { %810 = vadd.xlane.f32.xlu0 %v809_v39  ;;  %1428 = vmatprep.subr.mxu1 %v1481_v0 }
 0x520   :  { %1429 = vmatpush3.msra.mxu1 %v1263_v45 }
 0x521   :  { %1444 = vmatprep.subr.mxu1 %v1481_v0 }
 0x523   :  { %765 = vadd.xlane.f32.xlu0 %v764_v41 }
 0x5a8   :  { %v811_v47 = vpop.xlane.xlu0 %810 }
 0x5a9   :  { %v812_v48 = vrot.slane %v811_v47, 4 }
 0x5ab   :  { %v813_v49 = vadd.f32 %v812_v48, %v811_v47  ;;  %v1196_v47 = vrot.slane %v1270_v10, %v1645_v6 }
 0x5ad   :  { %v814_v50 = vrot.slane %v813_v49, 2 }
 0x5af   :  { %v815_v51 = vadd.f32 %v814_v50, %v813_v49 }
 0x5b1   :  { %v816_v52 = vrot.slane %v815_v51, 1 }
 0x5b3   :  { %v817_v53 = vadd.f32 %v816_v52, %v815_v51 }
 0x5b5   :  { %1457 = vpush %v817_v53 }
 0x5d9   :  { %v900_v55 = vpop.f32.mrf.mxu1 }
 0x5da   :  { %v901_v56 = vadd.f32 %v1261_v54, %v900_v55 }
 0x5db   :  { %v1421_v57 = vpop.f32.mrf.mxu1 }
 0x5dc   :  { %v904_v58 = vmax.f32 %v901_v56, 0.0 }
 0x5de   :  { %1431 = vmatmul.mubr.msk.f32.vlgmr.msra.gmra.mxu1 %vm127_vm2, %v904_v58 }
 0x5df   :  { %1445 = vmatpush3.msra.mxu1 %v1279_v59  ;;  %1452 = vmatprep.mubr.msk.f32.mxu1 %vm1482_vm0, %v1481_v0 }
 0x5e0   :  { %1446 = vmatprep.subr.mxu1 %v1481_v0 }
 0x5e1   :  { %1447 = vmatpush3.msra.mxu1 %v1278_v61 }
 0x5e2   :  { %1448 = vmatprep.subr.mxu1 %v1481_v0 }
 0x5e3   :  { %1449 = vmatpush3.msra.mxu1 %v1277_v63 }
 0x5e4   :  { %1450 = vmatprep.subr.mxu1 %v1481_v0  ;;  %v1084_v0 = vrot.slane %v1270_v10, %v1627_v30 }
 0x5e5   :  { %1451 = vmatpush3.msra.mxu1 %v1276_v2  ;;  %v766_v2 = vpop.xlane.xlu0 %765 }
 0x69e   :  { %v987_v5 = vpop.f32.mrf.mxu1 }
 0x69f   :  { %v988_v7 = vadd.f32 %v1268_v4, %v987_v5 }
 0x6a0   :  { %v1432_v8 = vpop.f32.mrf.mxu1 }
 0x6a1   :  { %v991_v9 = vmax.f32 %v988_v7, 0.0  ;;  %v767_v7 = vmul.f32 0.5, %v766_v2 }
 0x6a3   :  { %1442 = vmatmul.mubr.msk.f32.vlgmr.msra.gmra.mxu0 %vm127_vm2, %v991_v9  ;;  %1453 = vmatmul.mubr.msk.f32.vlgmr.msra.gmra.mxu1 %vm127_vm2, %v991_v9 }
 0x763   :  { %v1072_v11 = vpop.f32.mrf.mxu0  ;;  %v1151_v12 = vpop.f32.mrf.mxu1 }
 0x764   :  { %v1152_v14 = vadd.f32 %v1151_v12, %v1084_v0  ;;  %v1073_v20 = vadd.f32 %v1072_v11, %v1002_v19 }
 0x765   :  { %v1443_v15 = vpop.f32.mrf.mxu0  ;;  %v1454_v16 = vpop.f32.mrf.mxu1 }
 0x766   :  { %v1156_v17 = vmul.f32 0.5, %v1152_v14  ;;  %v1155_v13 = vsub.f32 %v1736_v34, %v1073_v20  ;;  %v1160_v6 = vsel %vm41_vm1, %v1152_v14, 0.0 }
 0x768   :  { %v1157_v18 = vmul.f32 1.442695, %v1156_v17 }
 0x76a   :  { %1475 = vpow2.f32 %v1157_v18 }
 0x777   :  { %v1476_v21 = vpop.eup %1475 }
 0x778   :  { %v1159_v22 = vmul.f32 %v1476_v21, %v1155_v13 }
 0x77a   :  { %v1165_v23 = vsel %vm41_vm1, %v1159_v22, 0.0  ;;  %v1172_v24 = vmul.f32 %v1159_v22, %v1159_v22 }
 0x77b   :  { %v1166_v25 = vrot.slane %v1165_v23, 4 }
 0x77c   :  { %v1173_v30 = vsel %vm41_vm1, %v1172_v24, 0.0 }
 0x77d   :  { %v1167_v26 = vadd.f32 %v1166_v25, %v1165_v23  ;;  %v1174_v27 = vrot.slane %v1173_v30, 4 }
 0x77f   :  { %v1168_v28 = vrot.slane %v1167_v26, 2  ;;  %v1175_v29 = vadd.f32 %v1174_v27, %v1173_v30 }
 0x781   :  { %v1169_v31 = vadd.f32 %v1168_v28, %v1167_v26  ;;  %v1176_v32 = vrot.slane %v1175_v29, 2 }
 0x783   :  { %v1170_v33 = vrot.slane %v1169_v31, 1  ;;  %v1177_v36 = vadd.f32 %v1176_v32, %v1175_v29 }
 0x785   :  { %v1171_v40 = vadd.f32 %v1170_v33, %v1169_v31  ;;  %v1178_v37 = vrot.slane %v1177_v36, 1 }
 0x787   :  { %v1180_v38 = vmul.f32 0.125, %v1171_v40  ;;  %v1179_v34 = vadd.f32 %v1178_v37, %v1177_v36 }
 0x789   :  { %v1181_v39 = vmul.f32 %v1180_v38, %v1171_v40  ;;  %v1186_v45 = vsub.f32 %v1159_v22, %v1180_v38 }
 0x78b   :  { %v1182_v41 = vsub.f32 %v1179_v34, %v1181_v39  ;;  %v1191_v48 = vmul.f32 %v1190_v44, %v1186_v45 }
 0x78d   :  { %v1183_v42 = vmul.f32 0.14285715, %v1182_v41 }
 0x78f   :  { %v1184_v43 = vadd.f32 1e-05, %v1183_v42 }
 0x791   :  { %1477 = vlog2.f32 %v1184_v43 }
 0x792   :  { %1479 = vrsqrt.f32 %v1184_v43 }
 0x79e   :  { %v1478_v46 = vpop.eup %1477 }
 0x79f   :  { %v1480_v49 = vpop.eup %1479  ;;  %v1199_v50 = vmul.f32 0.6931472, %v1478_v46 }
 0x7a0   :  { %v1192_v51 = vmul.f32 %v1480_v49, %v1191_v48 }
 0x7a1   :  { %v1200_v52 = vmul.f32 0.5, %v1199_v50 }
 0x7a2   :  { %v1197_v53 = vadd.f32 %v1196_v47, %v1192_v51 }
 0x7a3   :  { %v1201_v54 = vsub.f32 %v1270_v10, %v1200_v52 }
 0x7a4   :  { %1216 = vst.msk [vmem:[%s1830_s8] sm:$0xff] %vm41_vm1, %v1197_v53  ;;  %s1456_s8 = spop %1455 }
 0x7a5   :  { %v1203_v55 = vrot.slane %v1201_v54, 4  ;;  %s1458_s18 = spop %1457 }
 0x7a6   :  { %s819_s19 = sadd.f32 %s1458_s18, %s1456_s8 }
 0x7a7   :  { %v1205_v56 = vsel %vm412_vm3, %v1203_v55, 0.0 }
 0x7a8   :  { %1206 = vadd.xlane.f32.xlu1 %v1205_v56 }
 0x7ac   :  { %368 = vadd.xlane.f32.xlu1 %v367_v3 }
 0x7b0   :  { %1161 = vadd.xlane.f32.xlu1 %v1160_v6 }
 0x831   :  { %v1207_v57 = vpop.xlane.xlu1 %1206 }
 0x832   :  { %v1208_v58 = vrot.slane %v1207_v57, 4 }
 0x834   :  { %v1209_v59 = vadd.f32 %v1208_v58, %v1207_v57 }
 0x835   :  { %v369_v1 = vpop.xlane.xlu1 %368 }
 0x836   :  { %v1210_v60 = vrot.slane %v1209_v59, 2  ;;  %v370_v5 = vmul.f32 0.5, %v369_v1 }
 0x838   :  { %v1211_v61 = vadd.f32 %v1210_v60, %v1209_v59  ;;  %v768_v8 = vadd.f32 %v767_v7, %v370_v5 }
 0x839   :  { %v1162_v4 = vpop.xlane.xlu1 %1161 }
 0x83a   :  { %v1212_v62 = vrot.slane %v1211_v61, 1  ;;  %v1163_v35 = vmul.f32 0.5, %v1162_v4 }
 0x83c   :  { %v1213_v63 = vadd.f32 %v1212_v62, %v1211_v61  ;;  %v1164_v9 = vadd.f32 %v1163_v35, %v768_v8 }
 0x83e   :  { %1459 = vpush %v1213_v63 }
 0x86f   :  { %s1460_s20 = spop %1459 }
 0x870   :  { %s1215_s21 = sadd.f32 %s1460_s20, %s819_s19 }
 0x872   :  { %v1217_v10 = vstv %s1215_s21 }
 0x873   :  { %v1218_v0 = vadd.f32 %v1217_v10, %v1164_v9 }
 0x875   :  { %1220 = vst.msk [vmem:[%s1831_s9] sm:$0xff] %vm1219_vm4, %v1218_v0 }

</bundles_post_ra>
